<compile_context>
chip_gen: v5e
topology: v5e:2x2
jax: 0.10.0
libtpu: 0.0.40
codegen_flags: <defaults>
</compile_context>

<pallas_src>
import functools

import jax
import jax.numpy as jnp
from jax.experimental import pallas as pl
from jax.experimental.pallas import tpu as pltpu

_COLS = 512                       # lane-dense width: multiple of 128 lanes
_TILE_BYTES = 4 * 1024 * 1024     # ~4 MiB per block (2 in + 2 out buffers = 16 MiB)
_VMEM_LIMIT_BYTES = 32 * 1024 * 1024
_MIN_PALLAS_ELEMS = 1 << 17       # below ~128K elems, fused XLA sigmoid wins


def _sigmoid_kernel(x_ref, o_ref):
    x = x_ref[...]
    # Exact sigmoid: sigmoid(x) = 0.5 * (tanh(x/2) + 1). One EUP push per vreg,
    # no approximation error (the kernel is memory-bound anyway).
    o_ref[...] = (0.5 * (jnp.tanh(0.5 * x) + 1.0)).astype(o_ref.dtype)


@functools.partial(jax.jit, static_argnames=("force_pallas",))
def sigmoid_pallas(x: jax.Array, force_pallas: bool = False) -> jax.Array:
    """Elementwise sigmoid via a tiled Pallas TPU kernel. Preserves shape/dtype."""
    orig_shape = x.shape
    n = x.size

    # Tiny inputs: a single fused XLA op beats kernel-launch + reshape overhead.
    if n == 0 or (not force_pallas and n < _MIN_PALLAS_ELEMS):
        return jax.nn.sigmoid(x)

    itemsize = jnp.dtype(x.dtype).itemsize
    sub = 8 * max(1, 4 // itemsize)        # sublane multiple: 8 f32 / 16 bf16 / 32 int8

    # Flatten; pad only to a multiple of _COLS (needed for the 2-D reshape).
    flat = x.reshape(-1)
    padded_n = pl.cdiv(n, _COLS) * _COLS
    if padded_n != n:
        flat = jnp.pad(flat, (0, padded_n - n))
    rows = padded_n // _COLS
    slab = flat.reshape(rows, _COLS)

    # Block rows: a multiple of `sub`, capped at ~_TILE_BYTES per block, and at
    # least 2 grid blocks whenever possible so the "parallel" axis can be split
    # across v7x's two TensorCores.
    cap = max(sub, (_TILE_BYTES // (_COLS * itemsize)) // sub * sub)
    if rows <= sub:
        tr = rows                           # single full-extent block
    else:
        half = -(-rows // 2)                # ceil(rows / 2)
        half = -(-half // sub) * sub        # round up to sublane multiple
        tr = min(cap, half)
    grid = (pl.cdiv(rows, tr),)             # ragged last block is masked by Pallas

    out = pl.pallas_call(
        _sigmoid_kernel,
        out_shape=jax.ShapeDtypeStruct((rows, _COLS), slab.dtype),
        grid=grid,
        in_specs=[pl.BlockSpec((tr, _COLS), lambda i: (i, 0))],
        out_specs=pl.BlockSpec((tr, _COLS), lambda i: (i, 0)),
        compiler_params=pltpu.CompilerParams(
            dimension_semantics=("parallel",),
            vmem_limit_bytes=_VMEM_LIMIT_BYTES,
        ),
        cost_estimate=pl.CostEstimate(
            flops=2 * padded_n,                  # mul + add per element
            transcendentals=padded_n,            # one tanh per element
            bytes_accessed=2 * padded_n * itemsize,
        ),
    )(slab)

    out_flat = out.reshape(-1)
    if padded_n != n:
        out_flat = out_flat[:n]                  # fuses under jit
    return out_flat.reshape(orig_shape)


class MyModuleJax:
    """JAX/Pallas equivalent of the PyTorch MyModule (Sigmoid only, no params)."""

    def __call__(self, x: jax.Array) -> jax.Array:
        return sigmoid_pallas(x)


if __name__ == "__main__":
    module = MyModuleJax()

    # 1) Pallas kernel path (forced), aligned element count:
    #    (4096, 1, 2, 2) -> 16384 elems -> (32, 512) slab, 2 grid blocks.
    x = jax.random.normal(jax.random.PRNGKey(0), (4096, 1, 2, 2), dtype=jnp.float32)
    y = jax.block_until_ready(sigmoid_pallas(x, force_pallas=True))
    ref = jax.nn.sigmoid(x)
    assert y.shape == x.shape and y.dtype == x.dtype
    assert jnp.allclose(y, ref, atol=1e-5), "Pallas sigmoid mismatch (aligned case)"

    # 2) Pallas kernel path with a non-multiple-of-512 element count:
    #    (2500, 1, 2, 2) -> 10000 elems -> (20, 512) slab, partial last block.
    x_pad = jax.random.normal(jax.random.PRNGKey(1), (2500, 1, 2, 2), dtype=jnp.float32)
    y_pad = jax.block_until_ready(sigmoid_pallas(x_pad, force_pallas=True))
    assert jnp.allclose(y_pad, jax.nn.sigmoid(x_pad), atol=1e-5), \
        "Pallas sigmoid mismatch (padded / partial-block case)"

    # 3) Module path on the toy reference shape: small, uses the XLA fallback.
    x_tiny = jax.random.normal(jax.random.PRNGKey(2), (2, 1, 2, 2), dtype=jnp.float32)
    y_tiny = jax.block_until_ready(module(x_tiny))
    assert y_tiny.shape == x_tiny.shape
    assert jnp.allclose(y_tiny, jax.nn.sigmoid(x_tiny), atol=1e-6), \
        "fallback sigmoid mismatch"

    print("KERNEL_OK")
</pallas_src>

<mosaic_0001>
module attributes {stable_mosaic.version = 11 : i64} {
  func.func @_sigmoid_kernel(%arg0: i32, %arg1: memref<16x512xf32, #tpu.memory_space<vmem>>, %arg2: memref<16x512xf32, #tpu.memory_space<vmem>>) attributes {dimension_semantics = [#tpu.dimension_semantics<parallel>], iteration_bounds = array<i64: 2>, scalar_prefetch = 0 : i64, scratch_operands = 0 : i64, tpu.core_type = #tpu.core_type<tc>, window_params = [{transform_indices = @transform_0, window_bounds = array<i64: 16, 512>}, {transform_indices = @transform_1, window_bounds = array<i64: 16, 512>}]} {
    %c0 = arith.constant 0 : index
    %c0_0 = arith.constant 0 : index
    %0 = vector.load %arg1[%c0, %c0_0] : memref<16x512xf32, #tpu.memory_space<vmem>>, vector<16x512xf32>
    %cst = arith.constant 5.000000e-01 : f32
    %1 = vector.broadcast %cst : f32 to vector<16x512xf32>
    %2 = arith.mulf %1, %0 : vector<16x512xf32>
    %3 = math.tanh %2 : vector<16x512xf32>
    %cst_1 = arith.constant 1.000000e+00 : f32
    %4 = vector.broadcast %cst_1 : f32 to vector<16x512xf32>
    %5 = arith.addf %3, %4 : vector<16x512xf32>
    %cst_2 = arith.constant 5.000000e-01 : f32
    %6 = vector.broadcast %cst_2 : f32 to vector<16x512xf32>
    %7 = arith.mulf %6, %5 : vector<16x512xf32>
    %c0_3 = arith.constant 0 : index
    %c0_4 = arith.constant 0 : index
    %8 = vector.load %arg2[%c0_3, %c0_4] : memref<16x512xf32, #tpu.memory_space<vmem>>, vector<16x512xf32>
    tpu.vector_store %arg2[%c0_3, %c0_4], %7 {strides = array<i32>} : memref<16x512xf32, #tpu.memory_space<vmem>>, vector<16x512xf32>,
    return
  }
  func.func @transform_0(%arg0: i32) -> (i32, i32) {
    %c0_i32 = arith.constant 0 : i32
    %c0_i32_0 = arith.constant 0 : i32
    return %arg0, %c0_i32 : i32, i32
  }
  func.func @transform_1(%arg0: i32) -> (i32, i32) {
    %c0_i32 = arith.constant 0 : i32
    %c0_i32_0 = arith.constant 0 : i32
    return %arg0, %c0_i32 : i32, i32
  }
}

</mosaic_0001>

<bundles_post_ra>
// kernel: sigmoid_pallas.1
= control target key start
LH: loop header
LB: loop body
LE: loop exit
PB: predicated region body
PF: predicated region fallthrough
CT: control target
= control target key end

     0   :  { %s288_s6 = smov 0   ;;  %s312_s0 = inlined_call_operand.vmem [shape: f32[32,512], index: 0, kind: input, shape index: {}]   ;;  %s313_s1 = inlined_call_operand.vmem [shape: f32[32,512], index: 1, kind: output, shape index: {}]  }
   0x1 LB: > { %s231_s7 = sadd.s32 4294967295, %s276_s6   ;;  %p235_p0 = scmp.ge.s32.totalorder %s276_s6, 1  ;;  %s276_s6 = sphi %s288_s6, %s11_s6  }
   0x2   : > { %p89_p1 = scmp.lt.s32.totalorder %s276_s6, 3 }
   0x4   : > { %p90_p2 = pnand %p235_p0, %p89_p1 }
   0x5   : > { %s236_s8 = sshll.u32 (!%p90_p2), %s231_s7, 1 }
   0x6   : > { %93 = sbr.rel (%p90_p2) target bundleno = 36 (0x24), region = 24  ;;  %p112_p3 = scmp.lt.s32.totalorder (!%p90_p2), %s236_s8, 3 }
   0xb   : > { %s315_s8 = smov (!%p112_p3, %s236_s8), 3 }
   0xc   : > { %s244_s9 = sshll.u32 %s315_s8, 5 }
   0xd   : > { %s116_s12 = scalar_lea.vmem %s312_s0, %s244_s9  ;;  %s123_s15 = scalar_lea.vmem %s313_s1, %s244_s9 }
   0xe   : > { %v125_v0 = vld [vmem:[%s116_s12] sm:$0xff]  ;;  %v126_v1 = vld [vmem:[%s116_s12 + $0x8] sm:$0xff]  ;;  %v127_v2 = vld [vmem:[%s116_s12 + $0x10] sm:$0xff] }
   0xf   : > { %v133_v3 = vmul.f32 0.5, %v125_v0  ;;  %v134_v4 = vmul.f32 0.5, %v126_v1  ;;  %v135_v5 = vmul.f32 0.5, %v127_v2  ;;  %v128_v6 = vld [vmem:[%s116_s12 + $0x18] sm:$0xff]  ;;  %v129_v7 = vld [vmem:[%s116_s12 + $0x20] sm:$0xff]  ;;  %v130_v8 = vld [vmem:[%s116_s12 + $0x28] sm:$0xff] }
  0x10   : > { %v136_v9 = vmul.f32 0.5, %v128_v6  ;;  %v131_v10 = vld [vmem:[%s116_s12 + $0x30] sm:$0xff]  ;;  %v137_v11 = vmul.f32 0.5, %v129_v7  ;;  %v132_v12 = vld [vmem:[%s116_s12 + $0x38] sm:$0xff]  ;;  %v138_v13 = vmul.f32 0.5, %v130_v8 }
  0x11   : > { %254 = vtanh.f32 %v133_v3  ;;  %v139_v14 = vmul.f32 0.5, %v131_v10  ;;  %v140_v15 = vmul.f32 0.5, %v132_v12 }
  0x12   : > { %256 = vtanh.f32 %v134_v4 }
  0x13   : > { %258 = vtanh.f32 %v135_v5 }
  0x14   : > { %260 = vtanh.f32 %v136_v9 }
  0x15   : > { %262 = vtanh.f32 %v137_v11 }
  0x16   : > { %264 = vtanh.f32 %v138_v13 }
  0x17   : > { %v255_v16 = vpop.eup %254  ;;  %266 = vtanh.f32 %v139_v14 }
  0x18   : > { %v257_v17 = vpop.eup %256  ;;  %v149_v18 = vadd.f32 1.0, %v255_v16  ;;  %268 = vtanh.f32 %v140_v15 }
  0x19   : > { %v259_v19 = vpop.eup %258  ;;  %v150_v20 = vadd.f32 1.0, %v257_v17 }
  0x1a   : > { %v261_v21 = vpop.eup %260  ;;  %v157_v22 = vmul.f32 0.5, %v149_v18  ;;  %v151_v23 = vadd.f32 1.0, %v259_v19 }
  0x1b   : > { %v263_v24 = vpop.eup %262  ;;  %v158_v25 = vmul.f32 0.5, %v150_v20  ;;  %v152_v26 = vadd.f32 1.0, %v261_v21 }
  0x1c   : > { %v265_v27 = vpop.eup %264  ;;  %165 = vst [vmem:[%s123_s15] sm:$0xff] %v157_v22  ;;  %v159_v28 = vmul.f32 0.5, %v151_v23  ;;  %v153_v29 = vadd.f32 1.0, %v263_v24 }
  0x1d   : > { %v267_v30 = vpop.eup %266  ;;  %166 = vst [vmem:[%s123_s15 + $0x8] sm:$0xff] %v158_v25  ;;  %v160_v31 = vmul.f32 0.5, %v152_v26  ;;  %v154_v32 = vadd.f32 1.0, %v265_v27 }
  0x1e   : > { %v269_v33 = vpop.eup %268  ;;  %167 = vst [vmem:[%s123_s15 + $0x10] sm:$0xff] %v159_v28  ;;  %v161_v34 = vmul.f32 0.5, %v153_v29  ;;  %v155_v35 = vadd.f32 1.0, %v267_v30 }
  0x1f   : > { %168 = vst [vmem:[%s123_s15 + $0x18] sm:$0xff] %v160_v31  ;;  %v162_v36 = vmul.f32 0.5, %v154_v32  ;;  %v156_v37 = vadd.f32 1.0, %v269_v33 }
  0x20   : > { %169 = vst [vmem:[%s123_s15 + $0x20] sm:$0xff] %v161_v34  ;;  %v163_v38 = vmul.f32 0.5, %v155_v35 }
  0x21   : > { %170 = vst [vmem:[%s123_s15 + $0x28] sm:$0xff] %v162_v36  ;;  %v164_v39 = vmul.f32 0.5, %v156_v37 }
  0x22   : > { %171 = vst [vmem:[%s123_s15 + $0x30] sm:$0xff] %v163_v38 }
  0x23   : > { %172 = vst [vmem:[%s123_s15 + $0x38] sm:$0xff] %v164_v39 }
  0x24 PF: > { %s11_s6 = sadd.s32 1, %s276_s6  }
  0x25   : > { %p8_p4 = scmp.ge.s32.totalorder %s11_s6, 4  }
  0x27   :  { %10 = sbr.rel (!%p8_p4) target bundleno = 1 (0x1), region = 54 }

</bundles_post_ra>
